<compile_context>
chip_gen: v7x
topology: tpu7x:2x2x1
jax: 0.10.0
libtpu: 0.0.40
codegen_flags: <defaults>
</compile_context>

<pallas_src>
import jax
import jax.numpy as jnp
from jax.experimental import pallas as pl
from jax.experimental.pallas import tpu as pltpu

IMG_ROWS, IMG_COLS = 28, 28
IN_DIM = IMG_ROWS * IMG_COLS          # 784
H1, H2 = 128, 64
NUM_CLASSES = 10

# Lane-aligned (multiples of 128) padded dims.
IN_PAD = 896                          # 7 * 128
H2_PAD = 128
NC_PAD = 128


def _round_up(n, m):
    return ((n + m - 1) // m) * m


def _pad2(a, rows, cols, dtype):
    r, c = a.shape
    return jnp.pad(a, ((0, rows - r), (0, cols - c))).astype(dtype)


def mlp_softmax_kernel(x_ref, w1_ref, b1_ref, w2_ref, b2_ref, w3_ref, b3_ref, o_ref):
    # fc1 + bias + ReLU (bf16 MXU operands, f32 accumulation / elementwise)
    h1 = jnp.dot(x_ref[...], w1_ref[...], preferred_element_type=jnp.float32)
    h1 = jnp.maximum(h1 + b1_ref[...], 0.0)
    # TODO(synk): dropout(p=0.25) implemented as identity (eval-mode semantics).

    # fc2 + bias + ReLU
    h2 = jnp.dot(h1.astype(w2_ref.dtype), w2_ref[...],
                 preferred_element_type=jnp.float32)
    h2 = jnp.maximum(h2 + b2_ref[...], 0.0)

    # fc3 (padded to 128 output lanes)
    logits = jnp.dot(h2.astype(w3_ref.dtype), w3_ref[...],
                     preferred_element_type=jnp.float32) + b3_ref[...]

    # Mask padded class lanes so they do not pollute the softmax denominator.
    col = jax.lax.broadcasted_iota(jnp.int32, logits.shape, 1)
    logits = jnp.where(col < NUM_CLASSES, logits, -jnp.inf)

    # softmax over classes (dim=1)
    m = jnp.max(logits, axis=1, keepdims=True)
    e = jnp.exp(logits - m)
    denom = jnp.sum(e, axis=1, keepdims=True)
    o_ref[...] = (e * pl.reciprocal(denom, approx=True)).astype(o_ref.dtype)


def digit_classifier_forward(x, w1, b1, w2, b2, w3, b3):
    """x: [B, 784] f32. Weights are [in, out]; biases are [1, out]. Returns [B, 10] f32."""
    B = x.shape[0]
    TB = min(512, _round_up(max(B, 1), 8))     # batch tile, multiple of 8 sublanes
    Bp = _round_up(B, TB)
    grid = (Bp // TB,)

    # Pad + cast operands. MXU operands in bf16, biases in f32.
    xp = _pad2(x, Bp, IN_PAD, jnp.bfloat16)
    w1p = _pad2(w1, IN_PAD, H1, jnp.bfloat16)
    b1p = _pad2(b1, 1, H1, jnp.float32)
    w2p = _pad2(w2, H1, H2_PAD, jnp.bfloat16)
    b2p = _pad2(b2, 1, H2_PAD, jnp.float32)
    w3p = _pad2(w3, H2_PAD, NC_PAD, jnp.bfloat16)
    b3p = _pad2(b3, 1, NC_PAD, jnp.float32)

    weight_bytes = (w1p.size + w2p.size + w3p.size) * 2 + (b1p.size + b2p.size + b3p.size) * 4
    cost = pl.CostEstimate(
        flops=2 * Bp * (IN_PAD * H1 + H1 * H2_PAD + H2_PAD * NC_PAD),
        transcendentals=Bp * NC_PAD,
        bytes_accessed=Bp * IN_PAD * 2 + Bp * NC_PAD * 4 + weight_bytes,
    )

    out_padded = pl.pallas_call(
        mlp_softmax_kernel,
        out_shape=jax.ShapeDtypeStruct((Bp, NC_PAD), jnp.float32),
        grid=grid,
        in_specs=[
            pl.BlockSpec((TB, IN_PAD), lambda i: (i, 0)),     # x: streamed per batch tile
            pl.BlockSpec((IN_PAD, H1), lambda i: (0, 0)),     # weights/biases: resident in VMEM
            pl.BlockSpec((1, H1), lambda i: (0, 0)),
            pl.BlockSpec((H1, H2_PAD), lambda i: (0, 0)),
            pl.BlockSpec((1, H2_PAD), lambda i: (0, 0)),
            pl.BlockSpec((H2_PAD, NC_PAD), lambda i: (0, 0)),
            pl.BlockSpec((1, NC_PAD), lambda i: (0, 0)),
        ],
        out_specs=pl.BlockSpec((TB, NC_PAD), lambda i: (i, 0)),
        compiler_params=pltpu.CompilerParams(dimension_semantics=("parallel",)),
        cost_estimate=cost,
    )(xp, w1p, b1p, w2p, b2p, w3p, b3p)

    return out_padded[:B, :NUM_CLASSES]


def kaiming_normal(key, fan_in, fan_out):
    # matches nn.init.kaiming_normal_ default: std = sqrt(2 / fan_in)
    std = jnp.sqrt(2.0 / fan_in)
    # PyTorch weight is [out, in]; we generate [in, out] (pre-transposed) directly.
    return jax.random.normal(key, (fan_in, fan_out), jnp.float32) * std


def linear_bias_init(key, fan_in, fan_out):
    # PyTorch Linear default bias init: U(-1/sqrt(fan_in), 1/sqrt(fan_in))
    bound = 1.0 / jnp.sqrt(fan_in)
    return jax.random.uniform(key, (1, fan_out), jnp.float32, -bound, bound)


def reference_forward(x, w1, b1, w2, b2, w3, b3):
    h1 = jnp.maximum(x @ w1 + b1, 0.0)
    h2 = jnp.maximum(h1 @ w2 + b2, 0.0)
    logits = h2 @ w3 + b3
    return jax.nn.softmax(logits, axis=1)


if __name__ == "__main__":
    key = jax.random.PRNGKey(0)
    kx, k1, k2, k3, kb1, kb2, kb3 = jax.random.split(key, 7)

    B = 8
    x = jax.random.normal(kx, (B, IN_DIM), jnp.float32)

    w1 = kaiming_normal(k1, IN_DIM, H1)
    b1 = linear_bias_init(kb1, IN_DIM, H1)
    w2 = kaiming_normal(k2, H1, H2)
    b2 = linear_bias_init(kb2, H1, H2)
    w3 = kaiming_normal(k3, H2, NUM_CLASSES)
    b3 = linear_bias_init(kb3, H2, NUM_CLASSES)

    out = digit_classifier_forward(x, w1, b1, w2, b2, w3, b3)
    out = jax.block_until_ready(out)

    # sanity: shape + softmax rows sum to 1 (loose tol: approx reciprocal + bf16 operands)
    assert out.shape == (B, NUM_CLASSES)
    assert jnp.allclose(jnp.sum(out, axis=1), 1.0, atol=3e-3)

    ref = reference_forward(x, w1, b1, w2, b2, w3, b3)
    assert jnp.max(jnp.abs(out - ref)) < 8e-2

    print("KERNEL_OK")
</pallas_src>

<mosaic_0001>
module attributes {stable_mosaic.version = 11 : i64} {
  func.func @mlp_softmax_kernel(%arg0: i32, %arg1: memref<8x896xbf16, #tpu.memory_space<vmem>>, %arg2: memref<896x128xbf16, #tpu.memory_space<vmem>>, %arg3: memref<1x128xf32, #tpu.memory_space<vmem>>, %arg4: memref<128x128xbf16, #tpu.memory_space<vmem>>, %arg5: memref<1x128xf32, #tpu.memory_space<vmem>>, %arg6: memref<128x128xbf16, #tpu.memory_space<vmem>>, %arg7: memref<1x128xf32, #tpu.memory_space<vmem>>, %arg8: memref<8x128xf32, #tpu.memory_space<vmem>>) attributes {dimension_semantics = [#tpu.dimension_semantics<parallel>], iteration_bounds = array<i64: 1>, scalar_prefetch = 0 : i64, scratch_operands = 0 : i64, tpu.core_type = #tpu.core_type<tc>, window_params = [{transform_indices = @transform_0, window_bounds = array<i64: 8, 896>}, {pipeline_mode = #tpu.pipeline_mode<synchronous>, transform_indices = @transform_1, window_bounds = array<i64: 896, 128>}, {pipeline_mode = #tpu.pipeline_mode<synchronous>, transform_indices = @transform_2, window_bounds = array<i64: 1, 128>}, {pipeline_mode = #tpu.pipeline_mode<synchronous>, transform_indices = @transform_3, window_bounds = array<i64: 128, 128>}, {pipeline_mode = #tpu.pipeline_mode<synchronous>, transform_indices = @transform_4, window_bounds = array<i64: 1, 128>}, {pipeline_mode = #tpu.pipeline_mode<synchronous>, transform_indices = @transform_5, window_bounds = array<i64: 128, 128>}, {pipeline_mode = #tpu.pipeline_mode<synchronous>, transform_indices = @transform_6, window_bounds = array<i64: 1, 128>}, {transform_indices = @transform_7, window_bounds = array<i64: 8, 128>}]} {
    %c0 = arith.constant 0 : index
    %c0_0 = arith.constant 0 : index
    %0 = vector.load %arg1[%c0, %c0_0] : memref<8x896xbf16, #tpu.memory_space<vmem>>, vector<8x896xbf16>
    %c0_1 = arith.constant 0 : index
    %c0_2 = arith.constant 0 : index
    %1 = vector.load %arg2[%c0_1, %c0_2] : memref<896x128xbf16, #tpu.memory_space<vmem>>, vector<896x128xbf16>
    %cst = arith.constant dense<0.000000e+00> : vector<8x128xf32>
    %2 = tpu.matmul %0, %1, %cst {dimension_numbers = #tpu.dot_dimension_numbers<[1], [0], [0], [1], [0, 0, 1, 1], [], []>} : vector<8x896xbf16>, vector<896x128xbf16>, vector<8x128xf32> -> vector<8x128xf32>
    %c0_3 = arith.constant 0 : index
    %c0_4 = arith.constant 0 : index
    %3 = vector.load %arg3[%c0_3, %c0_4] : memref<1x128xf32, #tpu.memory_space<vmem>>, vector<1x128xf32>
    %4 = vector.broadcast %3 : vector<1x128xf32> to vector<8x128xf32>
    %5 = arith.addf %2, %4 : vector<8x128xf32>
    %cst_5 = arith.constant 0.000000e+00 : f32
    %6 = vector.broadcast %cst_5 : f32 to vector<8x128xf32>
    %7 = arith.maximumf %5, %6 : vector<8x128xf32>
    %8 = arith.truncf %7 : vector<8x128xf32> to vector<8x128xbf16>
    %c0_6 = arith.constant 0 : index
    %c0_7 = arith.constant 0 : index
    %9 = vector.load %arg4[%c0_6, %c0_7] : memref<128x128xbf16, #tpu.memory_space<vmem>>, vector<128x128xbf16>
    %cst_8 = arith.constant dense<0.000000e+00> : vector<8x128xf32>
    %10 = tpu.matmul %8, %9, %cst_8 {dimension_numbers = #tpu.dot_dimension_numbers<[1], [0], [0], [1], [0, 0, 1, 1], [], []>} : vector<8x128xbf16>, vector<128x128xbf16>, vector<8x128xf32> -> vector<8x128xf32>
    %c0_9 = arith.constant 0 : index
    %c0_10 = arith.constant 0 : index
    %11 = vector.load %arg5[%c0_9, %c0_10] : memref<1x128xf32, #tpu.memory_space<vmem>>, vector<1x128xf32>
    %12 = vector.broadcast %11 : vector<1x128xf32> to vector<8x128xf32>
    %13 = arith.addf %10, %12 : vector<8x128xf32>
    %cst_11 = arith.constant 0.000000e+00 : f32
    %14 = vector.broadcast %cst_11 : f32 to vector<8x128xf32>
    %15 = arith.maximumf %13, %14 : vector<8x128xf32>
    %16 = arith.truncf %15 : vector<8x128xf32> to vector<8x128xbf16>
    %c0_12 = arith.constant 0 : index
    %c0_13 = arith.constant 0 : index
    %17 = vector.load %arg6[%c0_12, %c0_13] : memref<128x128xbf16, #tpu.memory_space<vmem>>, vector<128x128xbf16>
    %cst_14 = arith.constant dense<0.000000e+00> : vector<8x128xf32>
    %18 = tpu.matmul %16, %17, %cst_14 {dimension_numbers = #tpu.dot_dimension_numbers<[1], [0], [0], [1], [0, 0, 1, 1], [], []>} : vector<8x128xbf16>, vector<128x128xbf16>, vector<8x128xf32> -> vector<8x128xf32>
    %c0_15 = arith.constant 0 : index
    %c0_16 = arith.constant 0 : index
    %19 = vector.load %arg7[%c0_15, %c0_16] : memref<1x128xf32, #tpu.memory_space<vmem>>, vector<1x128xf32>
    %20 = vector.broadcast %19 : vector<1x128xf32> to vector<8x128xf32>
    %21 = arith.addf %18, %20 : vector<8x128xf32>
    %22 = tpu.iota {dimensions = array<i32: 1>} : vector<8x128xi32>
    %c10_i32 = arith.constant 10 : i32
    %23 = vector.broadcast %c10_i32 : i32 to vector<8x128xi32>
    %24 = arith.cmpi slt, %22, %23 : vector<8x128xi32>
    %cst_17 = arith.constant 0xFF800000 : f32
    %25 = vector.broadcast %cst_17 : f32 to vector<8x128xf32>
    %26 = arith.select %24, %21, %25 : vector<8x128xi1>, vector<8x128xf32>
    %cst_18 = arith.constant dense<0xFF800000> : vector<8xf32>
    %27 = vector.multi_reduction <maximumf>, %26, %cst_18 [1] : vector<8x128xf32> to vector<8xf32>
    %28 = vector.shape_cast %27 : vector<8xf32> to vector<8x1xf32>
    %29 = vector.broadcast %28 : vector<8x1xf32> to vector<8x128xf32>
    %30 = arith.subf %26, %29 : vector<8x128xf32>
    %31 = math.exp %30 : vector<8x128xf32>
    %cst_19 = arith.constant dense<0.000000e+00> : vector<8xf32>
    %32 = vector.multi_reduction <add>, %31, %cst_19 [1] : vector<8x128xf32> to vector<8xf32>
    %33 = vector.shape_cast %32 : vector<8xf32> to vector<8x1xf32>
    %34 = tpu.reciprocal %33 {approx = true} : vector<8x1xf32> -> vector<8x1xf32>
    %35 = vector.broadcast %34 : vector<8x1xf32> to vector<8x128xf32>
    %36 = arith.mulf %31, %35 : vector<8x128xf32>
    %c0_20 = arith.constant 0 : index
    %c0_21 = arith.constant 0 : index
    %37 = vector.load %arg8[%c0_20, %c0_21] : memref<8x128xf32, #tpu.memory_space<vmem>>, vector<8x128xf32>
    tpu.vector_store %arg8[%c0_20, %c0_21], %36 {strides = array<i32>} : memref<8x128xf32, #tpu.memory_space<vmem>>, vector<8x128xf32>,
    return
  }
  func.func @transform_0(%arg0: i32) -> (i32, i32) {
    %c0_i32 = arith.constant 0 : i32
    %c0_i32_0 = arith.constant 0 : i32
    return %arg0, %c0_i32 : i32, i32
  }
  func.func @transform_1(%arg0: i32) -> (i32, i32) {
    %c0_i32 = arith.constant 0 : i32
    %c0_i32_0 = arith.constant 0 : i32
    %c0_i32_1 = arith.constant 0 : i32
    return %c0_i32, %c0_i32_0 : i32, i32
  }
  func.func @transform_2(%arg0: i32) -> (i32, i32) {
    %c0_i32 = arith.constant 0 : i32
    %c0_i32_0 = arith.constant 0 : i32
    %c0_i32_1 = arith.constant 0 : i32
    return %c0_i32, %c0_i32_0 : i32, i32
  }
  func.func @transform_3(%arg0: i32) -> (i32, i32) {
    %c0_i32 = arith.constant 0 : i32
    %c0_i32_0 = arith.constant 0 : i32
    %c0_i32_1 = arith.constant 0 : i32
    return %c0_i32, %c0_i32_0 : i32, i32
  }
  func.func @transform_4(%arg0: i32) -> (i32, i32) {
    %c0_i32 = arith.constant 0 : i32
    %c0_i32_0 = arith.constant 0 : i32
    %c0_i32_1 = arith.constant 0 : i32
    return %c0_i32, %c0_i32_0 : i32, i32
  }
  func.func @transform_5(%arg0: i32) -> (i32, i32) {
    %c0_i32 = arith.constant 0 : i32
    %c0_i32_0 = arith.constant 0 : i32
    %c0_i32_1 = arith.constant 0 : i32
    return %c0_i32, %c0_i32_0 : i32, i32
  }
  func.func @transform_6(%arg0: i32) -> (i32, i32) {
    %c0_i32 = arith.constant 0 : i32
    %c0_i32_0 = arith.constant 0 : i32
    %c0_i32_1 = arith.constant 0 : i32
    return %c0_i32, %c0_i32_0 : i32, i32
  }
  func.func @transform_7(%arg0: i32) -> (i32, i32) {
    %c0_i32 = arith.constant 0 : i32
    %c0_i32_0 = arith.constant 0 : i32
    return %arg0, %c0_i32 : i32, i32
  }
}

</mosaic_0001>

<bundles_post_ra>
// kernel: tpu_custom_call.1
= control target key start
LH: loop header
LB: loop body
LE: loop exit
PB: predicated region body
PF: predicated region fallthrough
CT: control target
= control target key end

     0   :  { %12 = vsyncpa [#allocation3], 0  ;;  %s1584_s0 = inlined_call_operand.hbm [shape: bf16[8,896], index: 0, kind: input, shape index: {}]   ;;  %s1585_s1 = inlined_call_operand.hbm [shape: bf16[896,128], index: 1, kind: input, shape index: {}]   ;;  %s1586_s2 = inlined_call_operand.vmem [shape: f32[1,128], index: 2, kind: input, shape index: {}]   ;;  %s1587_s3 = inlined_call_operand.hbm [shape: bf16[128,128], index: 3, kind: input, shape index: {}]   ;;  %s1588_s4 = inlined_call_operand.vmem [shape: f32[1,128], index: 4, kind: input, shape index: {}]   ;;  %s1589_s5 = inlined_call_operand.hbm [shape: bf16[128,128], index: 5, kind: input, shape index: {}]   ;;  %s1590_s6 = inlined_call_operand.vmem [shape: f32[1,128], index: 6, kind: input, shape index: {}]   ;;  %s1591_s7 = inlined_call_operand.hbm [shape: f32[8,128], index: 7, kind: output, shape index: {}]  }
   0x1   :  { %13 = vsyncpa [#allocation6], 0 }
   0x2   :  { %14 = vsyncpa [#allocation9], 0 }
   0x3   :  { %15 = vsyncpa [#allocation4], 0  ;;  %s1427_s24 = smov [#allocation5]   ;;  %s1309_s28 = scalar_lea.hbm %s1585_s1, 7168 }
   0x4   :  { %s31_s25 = sshll.u32 %s1427_s24, 4  ;;  %p1310_p0 = scmp.ne.s32.totalorder %s1585_s1, %s1309_s28  ;;  %s32_s25 = int_to_ptr.vmem [resolvable:$true] %s31_s25 }
   0x5   :  { %p1313_p1 = scmp.lt.u32.totalorder %s1309_s28, %s1585_s1 }
   0x7   :  { %p1315_p2 = pnand %p1313_p1, %p1310_p0 }
   0x9   :  { %1318 = shalt.err (!%p1315_p2)
}
   0xa   :  { %s1319_s10 = scalar_lea.vmem %s32_s25, 7168  ;;  %p1324_p4 = scmp.lt.s32.totalorder %s32_s25, %s32_s25 }
   0xb   :  { %p1320_p3 = scmp.ne.s32.totalorder %s32_s25, %s1319_s10  ;;  %p1325_p5 = scmp.lt.s32.totalorder %s1319_s10, %s1319_s10 }
   0xd   :  { %p1326_p6 = por %p1325_p5, %p1324_p4 }
   0xf   :  { %p1327_p7 = pnand %p1326_p6, %p1320_p3 }
  0x11   :  { %1330 = shalt.err (!%p1327_p7)
}
  0x12   :  { %s1428_s11 = smov 64   ;;  %s1429_s12 = smov 4  }
  0x13   :  { %37 = dma.hbm_to_vmem [thread:$0]  %s1585_s1, 7168, %s32_s25, [#allocation6], %s1428_s11, %s1428_s11, %s1429_s12  }
  0x14   :  { %s1430_s15 = smov [#allocation2]   ;;  %s1431_s17 = smov [#allocation7]  }
  0x15   :  { %s22_s16 = sshll.u32 %s1430_s15, 4  ;;  %s45_s18 = sshll.u32 %s1431_s17, 4  ;;  %s23_s16 = int_to_ptr.vmem [resolvable:$true] %s22_s16  ;;  %s46_s18 = int_to_ptr.vmem [resolvable:$true] %s45_s18 }
  0x16   :  { %s1331_s21 = scalar_lea.hbm %s1584_s0, 448 }
  0x17   :  { %p1332_p8 = scmp.ne.s32.totalorder %s1584_s0, %s1331_s21  ;;  %p1335_p9 = scmp.lt.u32.totalorder %s1331_s21, %s1584_s0 }
  0x19   :  { %p1337_p10 = pnand %p1335_p9, %p1332_p8 }
  0x1b   :  { %1340 = shalt.err (!%p1337_p10)
}
  0x1c   :  { %s1341_s1 = scalar_lea.vmem %s23_s16, 448  ;;  %p1346_p12 = scmp.lt.s32.totalorder %s23_s16, %s23_s16 }
  0x1d   :  { %p1342_p11 = scmp.ne.s32.totalorder %s23_s16, %s1341_s1  ;;  %p1347_p13 = scmp.lt.s32.totalorder %s1341_s1, %s1341_s1 }
  0x1f   :  { %p1348_p0 = por %p1347_p13, %p1346_p12 }
  0x21   :  { %p1349_p1 = pnand %p1348_p0, %p1342_p11 }
  0x23   :  { %1352 = shalt.err (!%p1349_p1)
}
  0x24   :  { %25 = dma.hbm_to_vmem [thread:$0]  %s1584_s0, 448, %s23_s16, [#allocation3]  }
  0x25   :  { %s1353_s30 = scalar_lea.hbm %s1587_s3, 1024 }
  0x26   :  { %p1354_p2 = scmp.ne.s32.totalorder %s1587_s3, %s1353_s30  ;;  %p1357_p3 = scmp.lt.u32.totalorder %s1353_s30, %s1587_s3 }
  0x28   :  { %p1359_p4 = pnand %p1357_p3, %p1354_p2 }
  0x2a   :  { %1362 = shalt.err (!%p1359_p4)
}
  0x2b   :  { %s1363_s14 = scalar_lea.vmem %s46_s18, 1024  ;;  %p1368_p6 = scmp.lt.s32.totalorder %s46_s18, %s46_s18 }
  0x2c   :  { %p1364_p5 = scmp.ne.s32.totalorder %s46_s18, %s1363_s14  ;;  %p1369_p7 = scmp.lt.s32.totalorder %s1363_s14, %s1363_s14 }
  0x2e   :  { %p1370_p8 = por %p1369_p7, %p1368_p6 }
  0x30   :  { %p1371_p9 = pnand %p1370_p8, %p1364_p5 }
  0x32   :  { %1374 = shalt.err (!%p1371_p9)
}
  0x33   :  { %51 = dma.hbm_to_vmem [thread:$0]  %s1587_s3, 1024, %s46_s18, [#allocation6], %s1428_s11, %s1428_s11, %s1429_s12  }
  0x34   :  { %s1432_s16 = smov [#allocation8]   ;;  %s1375_s21 = scalar_lea.hbm %s1589_s5, 1024 }
  0x35   :  { %s59_s17 = sshll.u32 %s1432_s16, 4  ;;  %p1376_p10 = scmp.ne.s32.totalorder %s1589_s5, %s1375_s21  ;;  %s60_s17 = int_to_ptr.vmem [resolvable:$true] %s59_s17 }
  0x36   :  { %p1379_p11 = scmp.lt.u32.totalorder %s1375_s21, %s1589_s5 }
  0x38   :  { %p1381_p12 = pnand %p1379_p11, %p1376_p10 }
  0x3a   :  { %1384 = shalt.err (!%p1381_p12)
}
  0x3b   :  { %s1385_s1 = scalar_lea.vmem %s60_s17, 1024  ;;  %p1390_p0 = scmp.lt.s32.totalorder %s60_s17, %s60_s17 }
  0x3c   :  { %p1386_p13 = scmp.ne.s32.totalorder %s60_s17, %s1385_s1  ;;  %p1391_p1 = scmp.lt.s32.totalorder %s1385_s1, %s1385_s1 }
  0x3e   :  { %p1392_p2 = por %p1391_p1, %p1390_p0 }
  0x40   :  { %p1393_p3 = pnand %p1392_p2, %p1386_p13 }
  0x42   :  { %1396 = shalt.err (!%p1393_p3)
}
  0x43   :  { %65 = dma.hbm_to_vmem [thread:$0]  %s1589_s5, 1024, %s60_s17, [#allocation9], %s1428_s11, %s1428_s11, %s1429_s12  }
  0x44   :  { %1419 = dma.done.wait [#allocation3], 448  }
  0x45   :  { %1420 = vsyncadd [#allocation3], 4294966848 }
  0x46   :  { %1421 = dma.done.wait [#allocation6], 8192  }
  0x47   :  { %1422 = vsyncadd [#allocation6], 4294959104 }
  0x48   :  { %1423 = dma.done.wait [#allocation9], 1024  }
  0x49   :  { %1424 = vsyncadd [#allocation9], 4294966272  ;;  %v1226_v0 = vld [vmem:[#allocation5 + $0x40] sm:$0xff]   ;;  %v1230_v4 = vld [vmem:[#allocation5 + $0x48] sm:$0xff]   ;;  %v1433_v42 = vmov 0.0   ;;  %vm1434_vm0 = vmmov 0  }
  0x4a   :  { %v1227_v1 = vld [vmem:[#allocation5] sm:$0xff]   ;;  %1064 = vmatprep.subr.bf16.mxu0 %v1226_v0  ;;  %v1231_v5 = vld [vmem:[#allocation5 + $0x8] sm:$0xff]   ;;  %v1234_v8 = vld [vmem:[#allocation5 + $0x50] sm:$0xff]  }
  0x4b   :  { %v1228_v2 = vld [vmem:[#allocation5 + $0xc0] sm:$0xff]   ;;  %1065 = vmatpush3.bf16.msra.mxu0 %v1227_v1  ;;  %v1232_v6 = vld [vmem:[#allocation5 + $0xc8] sm:$0xff]   ;;  %v1235_v9 = vld [vmem:[#allocation5 + $0x10] sm:$0xff]  }
  0x4c   :  { %v1229_v3 = vld [vmem:[#allocation5 + $0x80] sm:$0xff]   ;;  %1086 = vmatprep.subr.bf16.mxu1 %v1228_v2  ;;  %1066 = vmatprep.subr.bf16.mxu0 %v1230_v4  ;;  %v1233_v7 = vld [vmem:[#allocation5 + $0x88] sm:$0xff]   ;;  %v1236_v10 = vld [vmem:[#allocation5 + $0xd0] sm:$0xff]  }
  0x4d   :  { %1087 = vmatpush3.bf16.msra.mxu1 %v1229_v3  ;;  %v1237_v11 = vld [vmem:[#allocation5 + $0x90] sm:$0xff]   ;;  %v1238_v12 = vld [vmem:[#allocation5 + $0x58] sm:$0xff]   ;;  %v1242_v16 = vld [vmem:[#allocation5 + $0x60] sm:$0xff]  }
  0x4e   :  { %1088 = vmatprep.subr.bf16.mxu1 %v1232_v6  ;;  %v1239_v13 = vld [vmem:[#allocation5 + $0x18] sm:$0xff]   ;;  %v1243_v17 = vld [vmem:[#allocation5 + $0x20] sm:$0xff]   ;;  %v1246_v20 = vld [vmem:[#allocation5 + $0x68] sm:$0xff]  }
  0x4f   :  { %1067 = vmatpush3.bf16.msra.mxu0 %v1231_v5  ;;  %v1240_v14 = vld [vmem:[#allocation5 + $0xd8] sm:$0xff]   ;;  %v1244_v18 = vld [vmem:[#allocation5 + $0xe0] sm:$0xff]   ;;  %v1247_v21 = vld [vmem:[#allocation5 + $0x28] sm:$0xff]  }
  0x50   :  { %1068 = vmatprep.subr.bf16.mxu0 %v1234_v8  ;;  %v1241_v15 = vld [vmem:[#allocation5 + $0x98] sm:$0xff]   ;;  %v1245_v19 = vld [vmem:[#allocation5 + $0xa0] sm:$0xff]   ;;  %v1248_v22 = vld [vmem:[#allocation5 + $0xe8] sm:$0xff]  }
  0x51   :  { %1089 = vmatpush3.bf16.msra.mxu1 %v1233_v7  ;;  %v1249_v23 = vld [vmem:[#allocation5 + $0xa8] sm:$0xff]   ;;  %v1250_v24 = vld [vmem:[#allocation5 + $0x70] sm:$0xff]   ;;  %v1254_v28 = vld [vmem:[#allocation5 + $0x78] sm:$0xff]  }
  0x52   :  { %1090 = vmatprep.subr.bf16.mxu1 %v1236_v10  ;;  %v1251_v25 = vld [vmem:[#allocation5 + $0x30] sm:$0xff]   ;;  %v1255_v29 = vld [vmem:[#allocation5 + $0x38] sm:$0xff]   ;;  %v81_v31 = vld [vmem:[#allocation2] sm:$0xff] }
  0x53   :  { %1069 = vmatpush3.bf16.msra.mxu0 %v1235_v9  ;;  %v1252_v26 = vld [vmem:[#allocation5 + $0xf0] sm:$0xff]   ;;  %v1256_v30 = vld [vmem:[#allocation5 + $0xf8] sm:$0xff]   ;;  %v983_v32 = vcombine.low %v81_v31, %v81_v31  ;;  %v984_v33 = vcombine.high %v81_v31, %v81_v31  ;;  %v1260_v35 = vld [vmem:[#allocation5 + $0x140] sm:$0xff]  }
  0x54   :  { %1070 = vmatprep.subr.bf16.mxu0 %v1238_v12  ;;  %v1253_v27 = vld [vmem:[#allocation5 + $0xb0] sm:$0xff]   ;;  %v1259_v34 = vld [vmem:[#allocation5 + $0xb8] sm:$0xff]   ;;  %v1263_v39 = vld [vmem:[#allocation5 + $0x100] sm:$0xff]  }
  0x55   :  { %1091 = vmatpush3.bf16.msra.mxu1 %v1237_v11  ;;  %v82_v36 = vld [vmem:[#allocation2 + $0x8] sm:$0xff]  ;;  %597 = vmatprep.mubr.bf16.mxu0 %v984_v33  ;;  %v1264_v40 = vld [vmem:[#allocation5 + $0x180] sm:$0xff]   ;;  %v1271_v48 = vld [vmem:[#allocation5 + $0x158] sm:$0xff]  }
  0x56   :  { %1092 = vmatprep.subr.bf16.mxu1 %v1240_v14  ;;  %v985_v37 = vcombine.low %v82_v36, %v82_v36  ;;  %v986_v38 = vcombine.high %v82_v36, %v82_v36  ;;  %v1265_v41 = vld [vmem:[#allocation5 + $0x148] sm:$0xff]   ;;  %v1268_v45 = vld [vmem:[#allocation5 + $0x150] sm:$0xff]   ;;  %v1272_v49 = vld [vmem:[#allocation5 + $0x118] sm:$0xff]  }
  0x57   :  { %1071 = vmatpush3.bf16.msra.mxu0 %v1239_v13  ;;  %v1266_v43 = vld [vmem:[#allocation5 + $0x108] sm:$0xff]   ;;  %v1269_v46 = vld [vmem:[#allocation5 + $0x110] sm:$0xff]   ;;  %v1274_v50 = vld [vmem:[#allocation5 + $0x160] sm:$0xff]  }
  0x58   :  { %1072 = vmatprep.subr.bf16.mxu0 %v1242_v16  ;;  %637 = vmatprep.mubr.bf16.mxu1 %v986_v38  ;;  %v1267_v44 = vld [vmem:[#allocation5 + $0x188] sm:$0xff]   ;;  %v1270_v47 = vld [vmem:[#allocation5 + $0x190] sm:$0xff]   ;;  %v1273_v51 = vld [vmem:[#allocation5 + $0x198] sm:$0xff]  }
  0x59   :  { %1093 = vmatpush3.bf16.msra.mxu1 %v1241_v15  ;;  %v1275_v52 = vld [vmem:[#allocation5 + $0x120] sm:$0xff]   ;;  %v1277_v53 = vld [vmem:[#allocation5 + $0x168] sm:$0xff]   ;;  %v1280_v56 = vld [vmem:[#allocation5 + $0x170] sm:$0xff]  }
  0x5a   :  { %1094 = vmatprep.subr.bf16.mxu1 %v1244_v18  ;;  %v1276_v54 = vld [vmem:[#allocation5 + $0x1a0] sm:$0xff]   ;;  %v1278_v55 = vld [vmem:[#allocation5 + $0x128] sm:$0xff]   ;;  %v1281_v58 = vld [vmem:[#allocation5 + $0x130] sm:$0xff]  }
  0x5b   :  { %1073 = vmatpush3.bf16.msra.mxu0 %v1243_v17  ;;  %v1279_v57 = vld [vmem:[#allocation5 + $0x1a8] sm:$0xff]   ;;  %v83_v59 = vld [vmem:[#allocation2 + $0x10] sm:$0xff]  ;;  %v1288_v2 = vld [vmem:[#allocation2 + $0x18] ss:$0 sps:$4 sm:$0xff]  }
  0x5c   :  { %1074 = vmatprep.subr.bf16.mxu0 %v1246_v20  ;;  %v1282_v60 = vld [vmem:[#allocation5 + $0x1b0] sm:$0xff]   ;;  %v988_v61 = vcombine.high %v83_v59, %v83_v59  ;;  %v1283_v62 = vld [vmem:[#allocation5 + $0x178] sm:$0xff]   ;;  %v987_v1 = vcombine.low %v83_v59, %v83_v59  ;;  %v1289_v3 = vld [vmem:[#allocation7] sm:$0xff]  }
  0x5d   :  { %1095 = vmatpush3.bf16.msra.mxu1 %v1245_v19  ;;  %v1284_v63 = vld [vmem:[#allocation5 + $0x138] sm:$0xff]   ;;  %v1290_v4 = vld [vmem:[#allocation7 + $0x8] sm:$0xff]   ;;  %v1291_v5 = vld [vmem:[#allocation7 + $0x10] sm:$0xff]  }
  0x5e   :  { %1096 = vmatprep.subr.bf16.mxu1 %v1248_v22  ;;  %v1287_v0 = vld [vmem:[#allocation5 + $0x1b8] sm:$0xff]   ;;  %v1293_v7 = vld [vmem:[#allocation7 + $0x20] sm:$0xff]   ;;  %v1294_v8 = vld [vmem:[#allocation7 + $0x28] sm:$0xff]  }
  0x5f   :  { %1075 = vmatpush3.bf16.msra.mxu0 %v1247_v21  ;;  %v1292_v6 = vld [vmem:[#allocation7 + $0x18] sm:$0xff]   ;;  %v1295_v9 = vld [vmem:[#allocation7 + $0x30] sm:$0xff]   ;;  %v1297_v11 = vld [vmem:[#allocation8] sm:$0xff]  }
  0x60   :  { %1076 = vmatprep.subr.bf16.mxu0 %v1250_v24  ;;  %v1296_v10 = vld [vmem:[#allocation7 + $0x38] sm:$0xff]   ;;  %v1298_v12 = vld [vmem:[#allocation8 + $0x8] sm:$0xff]   ;;  %v1299_v13 = vld [vmem:[#allocation8 + $0x10] sm:$0xff]  }
  0x61   :  { %1097 = vmatpush3.bf16.msra.mxu1 %v1249_v23  ;;  %v1300_v14 = vld [vmem:[#allocation8 + $0x18] sm:$0xff]   ;;  %v1301_v15 = vld [vmem:[#allocation8 + $0x20] sm:$0xff]   ;;  %v1302_v16 = vld [vmem:[#allocation8 + $0x28] sm:$0xff]  }
  0x62   :  { %1098 = vmatprep.subr.bf16.mxu1 %v1252_v26  ;;  %v982_v18 = vld [vmem:[%s1586_s2] ss:$0 sm:$0xff] }
  0x63   :  { %1077 = vmatpush3.bf16.msra.mxu0 %v1251_v25 }
  0x64   :  { %1078 = vmatprep.subr.bf16.mxu0 %v1254_v28 }
  0x65   :  { %1099 = vmatpush3.bf16.msra.mxu1 %v1253_v27 }
  0x66   :  { %1100 = vmatprep.subr.bf16.mxu1 %v1256_v30 }
  0x67   :  { %1079 = vmatpush3.bf16.msra.mxu0 %v1255_v29 }
  0x68   :  { %1108 = vmatprep.subr.bf16.mxu0 %v1260_v35 }
  0x69   :  { %1101 = vmatpush3.bf16.msra.mxu1 %v1259_v34 }
  0x6a   :  { %598 = vmatmul.mubr.bf16.vlgmr.msra.gmra.mrb[0].mxu0 %v983_v32  ;;  %1157 = vmatprep.subr.bf16.mxu1 %v1433_v42 }
  0x6b   :  { %1109 = vmatpush3.bf16.msra.mxu0 %v1263_v39  ;;  %677 = vmatprep.mubr.bf16.mxu0 %v988_v61 }
  0x6c   :  { %638 = vmatmul.mubr.bf16.vlgmr.msra.gmra.mrb[0].mxu1 %v985_v37  ;;  %1110 = vmatprep.subr.bf16.mxu0 %v1265_v41 }
  0x6d   :  { %1158 = vmatpush3.bf16.msra.mxu1 %v1264_v40  ;;  %1173 = vmatprep.mubr.msk.bf16.mxu1 %vm1434_vm0, %v1433_v42 }
  0x6e   :  { %1159 = vmatprep.subr.bf16.mxu1 %v1433_v42 }
  0x6f   :  { %1111 = vmatpush3.bf16.msra.mxu0 %v1266_v43 }
  0x70   :  { %1112 = vmatprep.subr.bf16.mxu0 %v1268_v45  ;;  %v1304_v45 = vld [vmem:[#allocation8 + $0x38] sm:$0xff]  }
  0x71   :  { %1160 = vmatpush3.bf16.msra.mxu1 %v1267_v44  ;;  %v1303_v44 = vld [vmem:[#allocation8 + $0x30] sm:$0xff]  }
  0x72   :  { %1161 = vmatprep.subr.bf16.mxu1 %v1433_v42 }
  0x73   :  { %1113 = vmatpush3.bf16.msra.mxu0 %v1269_v46  ;;  %v1046_v46 = vld [vmem:[%s1588_s4] ss:$0 sm:$0xff]  ;;  %s1435_s4 = smov [#allocation10]  }
  0x74   :  { %1114 = vmatprep.subr.bf16.mxu0 %v1271_v48  ;;  %s971_s28 = sshll.u32 %s1435_s4, 4  ;;  %s972_s28 = int_to_ptr.vmem [resolvable:$true] %s971_s28 }
  0x75   :  { %1162 = vmatpush3.bf16.msra.mxu1 %v1270_v47  ;;  %p1402_p5 = scmp.lt.s32.totalorder %s972_s28, %s972_s28 }
  0x76   :  { %1163 = vmatprep.subr.bf16.mxu1 %v1433_v42 }
  0x77   :  { %1115 = vmatpush3.bf16.msra.mxu0 %v1272_v49 }
  0x78   :  { %1116 = vmatprep.subr.bf16.mxu0 %v1274_v50 }
  0x79   :  { %1164 = vmatpush3.bf16.msra.mxu1 %v1273_v51 }
  0x7a   :  { %1165 = vmatprep.subr.bf16.mxu1 %v1433_v42 }
  0x7b   :  { %1117 = vmatpush3.bf16.msra.mxu0 %v1275_v52 }
  0x7c   :  { %1118 = vmatprep.subr.bf16.mxu0 %v1277_v53 }
  0x7d   :  { %1166 = vmatpush3.bf16.msra.mxu1 %v1276_v54  ;;  %v951_v54 = vlaneseq }
  0x7e   :  { %1167 = vmatprep.subr.bf16.mxu1 %v1433_v42 }
  0x7f   :  { %1119 = vmatpush3.bf16.msra.mxu0 %v1278_v55  ;;  %v952_v55 = vand.u32 127, %v951_v54 }
  0x80   :  { %1120 = vmatprep.subr.bf16.mxu0 %v1280_v56 }
  0x81   :  { %1168 = vmatpush3.bf16.msra.mxu1 %v1279_v57  ;;  %vm953_vm1 = vcmp.lt.s32.totalorder %v952_v55, 10 }
  0x82   :  { %1169 = vmatprep.subr.bf16.mxu1 %v1433_v42 }
  0x83   :  { %1121 = vmatpush3.bf16.msra.mxu0 %v1281_v58 }
  0x84   :  { %1122 = vmatprep.subr.bf16.mxu0 %v1283_v62 }
  0x85   :  { %1170 = vmatpush3.bf16.msra.mxu1 %v1282_v60 }
  0x86   :  { %1171 = vmatprep.subr.bf16.mxu1 %v1433_v42 }
  0x87   :  { %1123 = vmatpush3.bf16.msra.mxu0 %v1284_v63 }
  0x88   :  { %1177 = vmatprep.subr.bf16.mxu0 %v1433_v42 }
  0x89   :  { %1172 = vmatpush3.bf16.msra.mxu1 %v1287_v0 }
  0x8a   :  { %678 = vmatmul.mubr.bf16.vlgmr.msra.gmra.mrb[4].mxu0 %v987_v1  ;;  %1197 = vmatprep.subr.bf16.mxu1 %v1433_v42 }
  0x8b   :  { %1193 = vmatprep.mubr.msk.bf16.mxu0 %vm1434_vm0, %v1433_v42  ;;  %1178 = vmatpush3.bf16.msra.mxu0 %v1289_v3 }
  0x8c   :  { %1174 = vmatmul.mubr.bf16.vlgmr.msra.gmra.mrb[4].mxu1 %v1288_v2  ;;  %1179 = vmatprep.subr.bf16.mxu0 %v1433_v42 }
  0x8d   :  { %1213 = vmatprep.mubr.msk.bf16.mxu1 %vm1434_vm0, %v1433_v42  ;;  %1198 = vmatpush3.bf16.msra.mxu1 %v1297_v11 }
  0x8e   :  { %1199 = vmatprep.subr.bf16.mxu1 %v1433_v42 }
  0x8f   :  { %1180 = vmatpush3.bf16.msra.mxu0 %v1290_v4 }
  0x90   :  { %1181 = vmatprep.subr.bf16.mxu0 %v1433_v42 }
  0x91   :  { %1200 = vmatpush3.bf16.msra.mxu1 %v1298_v12 }
  0x92   :  { %1201 = vmatprep.subr.bf16.mxu1 %v1433_v42 }
  0x93   :  { %1182 = vmatpush3.bf16.msra.mxu0 %v1291_v5 }
  0x94   :  { %1183 = vmatprep.subr.bf16.mxu0 %v1433_v42 }
  0x95   :  { %1202 = vmatpush3.bf16.msra.mxu1 %v1299_v13 }
  0x96   :  { %1203 = vmatprep.subr.bf16.mxu1 %v1433_v42 }
  0x97   :  { %1184 = vmatpush3.bf16.msra.mxu0 %v1292_v6 }
  0x98   :  { %1185 = vmatprep.subr.bf16.mxu0 %v1433_v42 }
  0x99   :  { %1204 = vmatpush3.bf16.msra.mxu1 %v1300_v14 }
  0x9a   :  { %1205 = vmatprep.subr.bf16.mxu1 %v1433_v42 }
  0x9b   :  { %1186 = vmatpush3.bf16.msra.mxu0 %v1293_v7 }
  0x9c   :  { %1187 = vmatprep.subr.bf16.mxu0 %v1433_v42 }
  0x9d   :  { %1206 = vmatpush3.bf16.msra.mxu1 %v1301_v15 }
  0x9e   :  { %1207 = vmatprep.subr.bf16.mxu1 %v1433_v42 }
  0x9f   :  { %1188 = vmatpush3.bf16.msra.mxu0 %v1294_v8 }
  0xa0   :  { %1189 = vmatprep.subr.bf16.mxu0 %v1433_v42 }
  0xa1   :  { %1208 = vmatpush3.bf16.msra.mxu1 %v1302_v16 }
  0xa2   :  { %1209 = vmatprep.subr.bf16.mxu1 %v1433_v42 }
  0xa3   :  { %1190 = vmatpush3.bf16.msra.mxu0 %v1295_v9 }
  0xa4   :  { %1191 = vmatprep.subr.bf16.mxu0 %v1433_v42 }
  0xa5   :  { %1210 = vmatpush3.bf16.msra.mxu1 %v1303_v44 }
  0xa6   :  { %1211 = vmatprep.subr.bf16.mxu1 %v1433_v42  ;;  %v1055_v42 = vld [vmem:[%s1590_s6] ss:$0 sm:$0xff]  ;;  %s1397_s6 = scalar_lea.vmem %s972_s28, 128 }
  0xa7   :  { %1192 = vmatpush3.bf16.msra.mxu0 %v1296_v10  ;;  %p1398_p4 = scmp.ne.s32.totalorder %s972_s28, %s1397_s6  ;;  %p1403_p6 = scmp.lt.s32.totalorder %s1397_s6, %s1397_s6 }
  0xa9   :  { %1212 = vmatpush3.bf16.msra.mxu1 %v1304_v45  ;;  %p1404_p7 = por %p1403_p6, %p1402_p5 }
  0xab   :  { %p1405_p8 = pnand %p1404_p7, %p1398_p4 }
 0x13d   :  { %v1080_v17 = vpop.f32.mrb[0].mxu0 }
 0x13e   :  { %v1081_v19 = vpop.f32.mrb[1].mxu0 }
 0x13f   :  { %v1082_v20 = vadd.f32 %v1081_v19, %v1080_v17  ;;  %v1083_v21 = vpop.f32.mrb[2].mxu0  ;;  %v1102_v22 = vpop.f32.mrb[0].mxu1 }
 0x140   :  { %v1084_v23 = vpop.f32.mrb[3].mxu0  ;;  %v1103_v24 = vpop.f32.mrb[1].mxu1 }
 0x141   :  { %v600_v25 = vadd.f32 %v1082_v20, %v982_v18  ;;  %v1104_v26 = vadd.f32 %v1103_v24, %v1102_v22  ;;  %v1105_v27 = vpop.f32.mrb[2].mxu1 }
 0x142   :  { %v1106_v28 = vpop.f32.mrb[3].mxu1 }
 0x143   :  { %v640_v29 = vadd.f32 %v1104_v26, %v600_v25 }
 0x15d   :  { %v1124_v30 = vpop.f32.mrb[4].mxu0 }
 0x15e   :  { %v1125_v31 = vpop.f32.mrb[5].mxu0 }
 0x15f   :  { %v1126_v32 = vadd.f32 %v1125_v31, %v1124_v30  ;;  %v1127_v33 = vpop.f32.mrb[6].mxu0  ;;  %v719_v34 = vpop.f32.mrb[4].mxu1 }
 0x160   :  { %v1128_v35 = vpop.f32.mrb[7].mxu0  ;;  %v1175_v36 = vpop.f32.mrb[5].mxu1 }
 0x161   :  { %v680_v37 = vadd.f32 %v1126_v32, %v640_v29  ;;  %v722_v38 = vpop.f32.mrb[6].mxu1 }
 0x162   :  { %v1176_v39 = vpop.f32.mrb[7].mxu1 }
 0x163   :  { %v720_v40 = vadd.f32 %v719_v34, %v680_v37 }
 0x165   :  { %v725_v41 = vmax.f32 %v720_v40, 0.0 }
 0x167   :  { %v726_v43 = vpack.c.bf16 %v725_v41, %v725_v41 }
 0x169   :  { %1194 = vmatmul.mubr.bf16.vlgmr.msra.gmra.mrb[8].mxu0 %v726_v43 }
 0x23c   :  { %v832_v47 = vpop.f32.mrb[8].mxu0 }
 0x23d   :  { %v833_v48 = vadd.f32 %v1046_v46, %v832_v47  ;;  %v1195_v49 = vpop.f32.mrb[9].mxu0 }
 0x23e   :  { %v835_v50 = vpop.f32.mrb[10].mxu0 }
 0x23f   :  { %v838_v51 = vmax.f32 %v833_v48, 0.0  ;;  %v1196_v52 = vpop.f32.mrb[11].mxu0 }
 0x241   :  { %v839_v53 = vpack.c.bf16 %v838_v51, %v838_v51 }
 0x243   :  { %1214 = vmatmul.mubr.bf16.vlgmr.msra.gmra.mrb[8].mxu1 %v839_v53 }
 0x316   :  { %v945_v56 = vpop.f32.mrb[8].mxu1 }
 0x317   :  { %v946_v57 = vadd.f32 %v1055_v42, %v945_v56  ;;  %v1215_v58 = vpop.f32.mrb[9].mxu1 }
 0x318   :  { %v948_v59 = vpop.f32.mrb[10].mxu1 }
 0x319   :  { %v1216_v60 = vpop.f32.mrb[11].mxu1  ;;  %v954_v61 = vsel %vm953_vm1, %v946_v57, -inf }
 0x31a   :  { %955 = vmax.xlane.f32.xlu0 %v954_v61 }
 0x3a7   :  { %v956_v62 = vpop.xlane.xlu0 %955 }
 0x3a8   :  { %v957_v63 = vsub.f32 %v954_v61, %v956_v62 }
 0x3aa   :  { %v958_v0 = vmul.f32 1.442695, %v957_v63 }
 0x3ac   :  { %1305 = vpow2.f32 %v958_v0 }
 0x3b6   :  { %v1306_v1 = vpop.eup %1305 }
 0x3b7   :  { %960 = vadd.xlane.f32.xlu0 %v1306_v1 }
 0x444   :  { %v961_v2 = vpop.xlane.xlu0 %960 }
 0x445   :  { %1307 = vrcp.f32 %v961_v2 }
 0x44f   :  { %v1308_v3 = vpop.eup %1307 }
 0x450   :  { %v963_v4 = vmul.f32 %v1308_v3, %v1306_v1 }
 0x452   :  { %964 = vst [vmem:[#allocation10] sm:$0xff] %v963_v4 }
 0x453   :  { %1408 = shalt.err (!%p1405_p8)
}
 0x454   :  { %s1409_s8 = scalar_lea.hbm %s1591_s7, 128 }
 0x455   :  { %p1410_p9 = scmp.ne.s32.totalorder %s1591_s7, %s1409_s8  ;;  %p1413_p10 = scmp.lt.u32.totalorder %s1409_s8, %s1591_s7 }
 0x457   :  { %p1415_p11 = pnand %p1413_p10, %p1410_p9 }
 0x459   :  { %1418 = shalt.err (!%p1415_p11)
}
 0x45a   :  { %974 = dma.vmem_to_hbm [thread:$0]  %s972_s28, 128, %s1591_s7, [#allocation4]  }
 0x45b   :  { %1425 = dma.done.wait [#allocation4], 128  }
 0x45c   :  { %1426 = vsyncadd [#allocation4], 4294967168 }
 0x45d   :  { %978 = vsyncpa [#allocation3], 1 }
 0x45e   :  { %979 = vsyncpa [#allocation6], 1 }
 0x45f   :  { %980 = vsyncpa [#allocation9], 1 }
 0x460   :  { %981 = vsyncpa [#allocation4], 1 }

</bundles_post_ra>
